<compile_context>
chip_gen: v5e
topology: v5e:2x2
jax: 0.10.0
libtpu: 0.0.40
codegen_flags: <defaults>
</compile_context>

<pallas_src>
import itertools

import jax
import jax.numpy as jnp
import numpy as np
from jax.experimental import pallas as pl
from jax.experimental.pallas import tpu as pltpu

try:  # optional — proper Hungarian solver if present
    from scipy.optimize import linear_sum_assignment as _scipy_lsa
except Exception:  # pragma: no cover
    _scipy_lsa = None


def _round_up(x: int, m: int) -> int:
    return (x + m - 1) // m * m


def _make_cost_kernel(cost_class_w: float, cost_primitive_w: float,
                      num_classes: int, use_mxu_class: bool):
    prescale_l1 = cost_primitive_w >= 0.0  # |w*a - w*b| = w*|a-b| only for w >= 0

    def cost_kernel(tgt_ids_ref, logits_ref, lines_ref, tlines_t_ref, c_ref):
        # ----- softmax over classes (small [tm, C] tile) -----
        logits = logits_ref[...].astype(jnp.float32)                 # [tm, C]
        m = jnp.max(logits, axis=-1, keepdims=True)
        e = jnp.exp(logits - m)
        denom = jnp.sum(e, axis=-1, keepdims=True)                   # [tm, 1]
        inv = pl.reciprocal(denom, approx=True)                      # EUP slot
        inv = inv * (2.0 - denom * inv)                              # Newton step -> ~fp32
        # fold the class weight into the small prob tile (not the [tm,Tp] tile)
        prob_w = e * (inv * cost_class_w)                            # [tm, C]

        tgt_ids = tgt_ids_ref[...]                                   # [1, Tp] int32
        lines = lines_ref[...].astype(jnp.float32)                   # [tm, 4]
        tlines_t = tlines_t_ref[...].astype(jnp.float32)             # [4, Tp]
        if prescale_l1:
            # fold the primitive weight into the small coordinate tiles
            lines = lines * cost_primitive_w
            tlines_t = tlines_t * cost_primitive_w

        t_pad = tgt_ids.shape[-1]

        # ----- single fused accumulator, initialized from the first L1 term -----
        acc = jnp.abs(lines[:, 0:1] - tlines_t[0:1, :])              # [tm, Tp]
        for k in range(1, 4):                                        # static unroll (4 coords)
            acc = acc + jnp.abs(lines[:, k:k + 1] - tlines_t[k:k + 1, :])
        if not prescale_l1:
            acc = acc * cost_primitive_w                             # rare negative-weight path

        # ----- class cost: subtract cost_class * prob[:, tgt_ids] -----
        if use_mxu_class:
            # one-hot MXU matmul path for many classes (DETR-style C ~ 90)
            cls = jax.lax.broadcasted_iota(jnp.int32, (num_classes, t_pad), 0)
            onehot = (cls == tgt_ids).astype(jnp.float32)            # [C, Tp]; pad id -1 matches none
            acc = acc - jnp.dot(prob_w, onehot, preferred_element_type=jnp.float32)
        else:
            for k in range(num_classes):                             # static unroll (tiny C)
                sel = tgt_ids == k                                   # [1, Tp]
                acc = acc - jnp.where(sel, prob_w[:, k:k + 1], 0.0)

        c_ref[...] = acc

    return cost_kernel


def _choose_tiling(N: int, block_rows: int):
    """Pick (tm, n_pad) so the row tile is big (amortizes ~0.35us/step),
    the grid-step count is even (v7x megacore splits 'parallel' rows across
    2 TCs), and tm divides N when possible (skips wrapper padding copies)."""
    n8 = _round_up(max(N, 1), 8)
    if n8 <= 8:
        return n8, n8
    steps = max(2, -(-n8 // block_rows))     # at least 2 so both TCs get work
    if steps % 2:
        steps += 1                           # even split across v7x's two TensorCores
    tm = _round_up(-(-n8 // steps), 8)
    return tm, steps * tm


def pallas_cost_matrix(out_logits, out_lines, tgt_lines, tgt_ids,
                       cost_class=1.0, cost_primitive=1.0,
                       block_rows=1024, t_pad_multiple=128,
                       mxu_class_threshold=16):
    """Compute the matcher cost matrix with a Pallas kernel.

    out_logits: [N, num_classes] float32  (N = bs * num_queries, flattened)
    out_lines : [N, 4] float32
    tgt_lines : [T, 4] float32  (all targets concatenated across the batch)
    tgt_ids   : [T]    int32

    Returns a device array of shape [N, T] (padding sliced off on device).
    """
    N, num_classes = out_logits.shape
    T = int(tgt_lines.shape[0])

    t_pad = _round_up(max(T, 1), t_pad_multiple)        # lane-dense target axis
    tm, n_pad = _choose_tiling(N, block_rows)
    grid = (n_pad // tm,)

    # Row-axis padding is skipped entirely when tm already divides N.
    if n_pad == N:
        logits_p = out_logits.astype(jnp.float32)
        lines_p = out_lines.astype(jnp.float32)
    else:
        logits_p = jnp.zeros((n_pad, num_classes), jnp.float32).at[:N].set(
            out_logits.astype(jnp.float32))
        lines_p = jnp.zeros((n_pad, 4), jnp.float32).at[:N].set(
            out_lines.astype(jnp.float32))
    tgt_ids_p = jnp.full((1, t_pad), -1, jnp.int32).at[0, :T].set(
        tgt_ids.astype(jnp.int32))                       # -1 matches no class
    tlines_t_p = jnp.zeros((4, t_pad), jnp.float32).at[:, :T].set(
        tgt_lines.T.astype(jnp.float32))

    kernel = _make_cost_kernel(float(cost_class), float(cost_primitive),
                               int(num_classes),
                               use_mxu_class=int(num_classes) > mxu_class_threshold)

    c_pad = pl.pallas_call(
        kernel,
        out_shape=jax.ShapeDtypeStruct((n_pad, t_pad), jnp.float32),
        grid=grid,
        in_specs=[
            pl.BlockSpec((1, t_pad), lambda i: (0, 0)),            # tgt_ids (resident)
            pl.BlockSpec((tm, num_classes), lambda i: (i, 0)),     # logits (row-tiled)
            pl.BlockSpec((tm, 4), lambda i: (i, 0)),               # pred lines (row-tiled)
            pl.BlockSpec((4, t_pad), lambda i: (0, 0)),            # target lines (transposed, resident)
        ],
        out_specs=pl.BlockSpec((tm, t_pad), lambda i: (i, 0)),     # lane-dense output tile
        compiler_params=pltpu.CompilerParams(
            dimension_semantics=("parallel",),                     # v7x: shard rows across 2 TCs
            vmem_limit_bytes=32 * 1024 * 1024),
    )(tgt_ids_p, logits_p, lines_p, tlines_t_p)

    # Slice padding on DEVICE (cheap) so only the real [N, T] matrix crosses PCIe.
    return c_pad[:N, :T]


def _brute_force_assignment(cost):
    """Fallback rectangular assignment (rows >= cols), toy sizes only."""
    cost = np.asarray(cost)
    nq, nt = cost.shape
    best_perm, best_val = None, np.inf
    for perm in itertools.permutations(range(nq), nt):
        v = sum(cost[perm[j], j] for j in range(nt))
        if v < best_val:
            best_val, best_perm = v, perm
    pairs = sorted(zip(best_perm, range(nt)))
    rows = np.array([p[0] for p in pairs], dtype=np.int64)
    cols = np.array([p[1] for p in pairs], dtype=np.int64)
    return rows, cols


def _linear_sum_assignment(cost):
    # TODO(synk): Hungarian algorithm itself has no clean Pallas equivalent; it is
    # solved on the host (scipy when available) over the kernel-produced cost matrix.
    if _scipy_lsa is not None:
        r, c = _scipy_lsa(np.asarray(cost))
        return np.asarray(r, dtype=np.int64), np.asarray(c, dtype=np.int64)
    return _brute_force_assignment(cost)


def hungarian_matcher_primitive(outputs, targets, cost_class=1.0, cost_primitive=1.0,
                                primitive_name="shapes"):
    """JAX/Pallas equivalent of HungarianMatcher_Primitive.forward."""
    pred_logits = outputs["pred_logits"]                     # [bs, nq, num_classes]
    pred_prim = outputs[f"pred_{primitive_name}"]            # [bs, nq, 4]
    bs, num_queries = pred_logits.shape[:2]

    out_logits = pred_logits.reshape(bs * num_queries, -1)
    out_lines = pred_prim.reshape(bs * num_queries, -1)
    tgt_lines = jnp.concatenate([v[primitive_name] for v in targets], axis=0)
    tgt_ids = jnp.concatenate([v[f"{primitive_name}_labels"] for v in targets], axis=0)

    c_dev = pallas_cost_matrix(out_logits, out_lines, tgt_lines, tgt_ids,
                               cost_class=cost_class, cost_primitive=cost_primitive)
    c_dev = jax.block_until_ready(c_dev)
    C = np.asarray(c_dev).reshape(bs, num_queries, -1)

    sizes = [int(v[primitive_name].shape[0]) for v in targets]
    indices = []
    off = 0
    for b, sz in enumerate(sizes):
        indices.append(_linear_sum_assignment(C[b][:, off:off + sz]))
        off += sz
    return indices, C


if __name__ == "__main__":
    key = jax.random.PRNGKey(0)
    bs, num_queries, num_classes = 2, 8, 4
    sizes = [3, 4]

    k1, k2, k3, k4 = jax.random.split(key, 4)
    outputs = {
        "pred_logits": jax.random.normal(k1, (bs, num_queries, num_classes), jnp.float32),
        "pred_shapes": jax.random.uniform(k2, (bs, num_queries, 4), jnp.float32),
    }
    tkeys = jax.random.split(k3, len(sizes))
    lkeys = jax.random.split(k4, len(sizes))
    targets = [
        {
            "shapes": jax.random.uniform(tkeys[i], (sizes[i], 4), jnp.float32),
            "shapes_labels": jax.random.randint(lkeys[i], (sizes[i],), 0, num_classes, jnp.int32),
        }
        for i in range(len(sizes))
    ]

    indices, C = hungarian_matcher_primitive(outputs, targets)

    # Reference check of the Pallas-computed cost matrix (plain numpy).
    logits_np = np.asarray(outputs["pred_logits"]).reshape(bs * num_queries, -1)
    lines_np = np.asarray(outputs["pred_shapes"]).reshape(bs * num_queries, -1)
    tlines_np = np.concatenate([np.asarray(v["shapes"]) for v in targets], axis=0)
    tids_np = np.concatenate([np.asarray(v["shapes_labels"]) for v in targets], axis=0)
    e = np.exp(logits_np - logits_np.max(-1, keepdims=True))
    prob = e / e.sum(-1, keepdims=True)
    cost_class_ref = -prob[:, tids_np]
    cost_l1_ref = np.abs(lines_np[:, None, :] - tlines_np[None, :, :]).sum(-1)
    C_ref = (cost_l1_ref + cost_class_ref).reshape(bs, num_queries, -1)
    assert np.allclose(C, C_ref, atol=1e-4), "cost matrix mismatch"
    assert all(len(i) == len(j) == sizes[b] for b, (i, j) in enumerate(indices))

    # Also exercise non-unit cost weights (weights are folded into small tiles in-kernel).
    indices_w, C_w = hungarian_matcher_primitive(outputs, targets,
                                                 cost_class=2.0, cost_primitive=0.5)
    C_w_ref = (0.5 * cost_l1_ref + 2.0 * cost_class_ref).reshape(bs, num_queries, -1)
    assert np.allclose(C_w, C_w_ref, atol=1e-4), "weighted cost matrix mismatch"

    print("KERNEL_OK")
</pallas_src>

<mosaic_0001>
module attributes {stable_mosaic.version = 11 : i64} {
  func.func @cost_kernel(%arg0: i32, %arg1: memref<1x128xi32, #tpu.memory_space<vmem>>, %arg2: memref<8x4xf32, #tpu.memory_space<vmem>>, %arg3: memref<8x4xf32, #tpu.memory_space<vmem>>, %arg4: memref<4x128xf32, #tpu.memory_space<vmem>>, %arg5: memref<8x128xf32, #tpu.memory_space<vmem>>) attributes {dimension_semantics = [#tpu.dimension_semantics<parallel>], iteration_bounds = array<i64: 2>, scalar_prefetch = 0 : i64, scratch_operands = 0 : i64, tpu.core_type = #tpu.core_type<tc>, window_params = [{pipeline_mode = #tpu.pipeline_mode<synchronous>, transform_indices = @transform_0, window_bounds = array<i64: 1, 128>}, {transform_indices = @transform_1, window_bounds = array<i64: 8, 4>}, {transform_indices = @transform_2, window_bounds = array<i64: 8, 4>}, {pipeline_mode = #tpu.pipeline_mode<synchronous>, transform_indices = @transform_3, window_bounds = array<i64: 4, 128>}, {transform_indices = @transform_4, window_bounds = array<i64: 8, 128>}]} {
    %c0 = arith.constant 0 : index
    %c0_0 = arith.constant 0 : index
    %0 = vector.load %arg2[%c0, %c0_0] : memref<8x4xf32, #tpu.memory_space<vmem>>, vector<8x4xf32>
    %cst = arith.constant dense<0xFF800000> : vector<8xf32>
    %1 = vector.multi_reduction <maximumf>, %0, %cst [1] : vector<8x4xf32> to vector<8xf32>
    %2 = vector.shape_cast %1 : vector<8xf32> to vector<8x1xf32>
    %3 = vector.broadcast %2 : vector<8x1xf32> to vector<8x4xf32>
    %4 = arith.subf %0, %3 : vector<8x4xf32>
    %5 = math.exp %4 : vector<8x4xf32>
    %cst_1 = arith.constant dense<0.000000e+00> : vector<8xf32>
    %6 = vector.multi_reduction <add>, %5, %cst_1 [1] : vector<8x4xf32> to vector<8xf32>
    %7 = vector.shape_cast %6 : vector<8xf32> to vector<8x1xf32>
    %8 = tpu.reciprocal %7 {approx = true} : vector<8x1xf32> -> vector<8x1xf32>
    %9 = arith.mulf %7, %8 : vector<8x1xf32>
    %cst_2 = arith.constant 2.000000e+00 : f32
    %10 = vector.broadcast %cst_2 : f32 to vector<8x1xf32>
    %11 = arith.subf %10, %9 : vector<8x1xf32>
    %12 = arith.mulf %8, %11 : vector<8x1xf32>
    %cst_3 = arith.constant 1.000000e+00 : f32
    %13 = vector.broadcast %cst_3 : f32 to vector<8x1xf32>
    %14 = arith.mulf %12, %13 : vector<8x1xf32>
    %15 = vector.broadcast %14 : vector<8x1xf32> to vector<8x4xf32>
    %16 = arith.mulf %5, %15 : vector<8x4xf32>
    %c0_4 = arith.constant 0 : index
    %c0_5 = arith.constant 0 : index
    %17 = vector.load %arg1[%c0_4, %c0_5] : memref<1x128xi32, #tpu.memory_space<vmem>>, vector<1x128xi32>
    %c0_6 = arith.constant 0 : index
    %c0_7 = arith.constant 0 : index
    %18 = vector.load %arg3[%c0_6, %c0_7] : memref<8x4xf32, #tpu.memory_space<vmem>>, vector<8x4xf32>
    %c0_8 = arith.constant 0 : index
    %c0_9 = arith.constant 0 : index
    %19 = vector.load %arg4[%c0_8, %c0_9] : memref<4x128xf32, #tpu.memory_space<vmem>>, vector<4x128xf32>
    %cst_10 = arith.constant 1.000000e+00 : f32
    %20 = vector.broadcast %cst_10 : f32 to vector<8x4xf32>
    %21 = arith.mulf %18, %20 : vector<8x4xf32>
    %cst_11 = arith.constant 1.000000e+00 : f32
    %22 = vector.broadcast %cst_11 : f32 to vector<4x128xf32>
    %23 = arith.mulf %19, %22 : vector<4x128xf32>
    %24 = vector.extract_strided_slice %21 {offsets = [0, 0], sizes = [8, 1], strides = [1, 1]} : vector<8x4xf32> to vector<8x1xf32>
    %25 = vector.extract_strided_slice %23 {offsets = [0, 0], sizes = [1, 128], strides = [1, 1]} : vector<4x128xf32> to vector<1x128xf32>
    %26 = vector.broadcast %24 : vector<8x1xf32> to vector<8x128xf32>
    %27 = vector.broadcast %25 : vector<1x128xf32> to vector<8x128xf32>
    %28 = arith.subf %26, %27 : vector<8x128xf32>
    %29 = math.absf %28 : vector<8x128xf32>
    %30 = vector.extract_strided_slice %21 {offsets = [0, 1], sizes = [8, 1], strides = [1, 1]} : vector<8x4xf32> to vector<8x1xf32>
    %31 = vector.extract_strided_slice %23 {offsets = [1, 0], sizes = [1, 128], strides = [1, 1]} : vector<4x128xf32> to vector<1x128xf32>
    %32 = vector.broadcast %30 : vector<8x1xf32> to vector<8x128xf32>
    %33 = vector.broadcast %31 : vector<1x128xf32> to vector<8x128xf32>
    %34 = arith.subf %32, %33 : vector<8x128xf32>
    %35 = math.absf %34 : vector<8x128xf32>
    %36 = arith.addf %29, %35 : vector<8x128xf32>
    %37 = vector.extract_strided_slice %21 {offsets = [0, 2], sizes = [8, 1], strides = [1, 1]} : vector<8x4xf32> to vector<8x1xf32>
    %38 = vector.extract_strided_slice %23 {offsets = [2, 0], sizes = [1, 128], strides = [1, 1]} : vector<4x128xf32> to vector<1x128xf32>
    %39 = vector.broadcast %37 : vector<8x1xf32> to vector<8x128xf32>
    %40 = vector.broadcast %38 : vector<1x128xf32> to vector<8x128xf32>
    %41 = arith.subf %39, %40 : vector<8x128xf32>
    %42 = math.absf %41 : vector<8x128xf32>
    %43 = arith.addf %36, %42 : vector<8x128xf32>
    %44 = vector.extract_strided_slice %21 {offsets = [0, 3], sizes = [8, 1], strides = [1, 1]} : vector<8x4xf32> to vector<8x1xf32>
    %45 = vector.extract_strided_slice %23 {offsets = [3, 0], sizes = [1, 128], strides = [1, 1]} : vector<4x128xf32> to vector<1x128xf32>
    %46 = vector.broadcast %44 : vector<8x1xf32> to vector<8x128xf32>
    %47 = vector.broadcast %45 : vector<1x128xf32> to vector<8x128xf32>
    %48 = arith.subf %46, %47 : vector<8x128xf32>
    %49 = math.absf %48 : vector<8x128xf32>
    %50 = arith.addf %43, %49 : vector<8x128xf32>
    %c0_i32 = arith.constant 0 : i32
    %51 = vector.broadcast %c0_i32 : i32 to vector<1x128xi32>
    %52 = arith.cmpi eq, %17, %51 : vector<1x128xi32>
    %53 = vector.extract_strided_slice %16 {offsets = [0, 0], sizes = [8, 1], strides = [1, 1]} : vector<8x4xf32> to vector<8x1xf32>
    %cst_12 = arith.constant 0.000000e+00 : f32
    %54 = vector.shape_cast %52 : vector<1x128xi1> to vector<1x128xi1>
    %55 = vector.broadcast %54 : vector<1x128xi1> to vector<8x128xi1>
    %56 = vector.shape_cast %53 : vector<8x1xf32> to vector<8x1xf32>
    %57 = vector.broadcast %56 : vector<8x1xf32> to vector<8x128xf32>
    %58 = vector.broadcast %cst_12 : f32 to vector<8x128xf32>
    %59 = arith.select %55, %57, %58 : vector<8x128xi1>, vector<8x128xf32>
    %60 = arith.subf %50, %59 : vector<8x128xf32>
    %c1_i32 = arith.constant 1 : i32
    %61 = vector.broadcast %c1_i32 : i32 to vector<1x128xi32>
    %62 = arith.cmpi eq, %17, %61 : vector<1x128xi32>
    %63 = vector.extract_strided_slice %16 {offsets = [0, 1], sizes = [8, 1], strides = [1, 1]} : vector<8x4xf32> to vector<8x1xf32>
    %cst_13 = arith.constant 0.000000e+00 : f32
    %64 = vector.shape_cast %62 : vector<1x128xi1> to vector<1x128xi1>
    %65 = vector.broadcast %64 : vector<1x128xi1> to vector<8x128xi1>
    %66 = vector.shape_cast %63 : vector<8x1xf32> to vector<8x1xf32>
    %67 = vector.broadcast %66 : vector<8x1xf32> to vector<8x128xf32>
    %68 = vector.broadcast %cst_13 : f32 to vector<8x128xf32>
    %69 = arith.select %65, %67, %68 : vector<8x128xi1>, vector<8x128xf32>
    %70 = arith.subf %60, %69 : vector<8x128xf32>
    %c2_i32 = arith.constant 2 : i32
    %71 = vector.broadcast %c2_i32 : i32 to vector<1x128xi32>
    %72 = arith.cmpi eq, %17, %71 : vector<1x128xi32>
    %73 = vector.extract_strided_slice %16 {offsets = [0, 2], sizes = [8, 1], strides = [1, 1]} : vector<8x4xf32> to vector<8x1xf32>
    %cst_14 = arith.constant 0.000000e+00 : f32
    %74 = vector.shape_cast %72 : vector<1x128xi1> to vector<1x128xi1>
    %75 = vector.broadcast %74 : vector<1x128xi1> to vector<8x128xi1>
    %76 = vector.shape_cast %73 : vector<8x1xf32> to vector<8x1xf32>
    %77 = vector.broadcast %76 : vector<8x1xf32> to vector<8x128xf32>
    %78 = vector.broadcast %cst_14 : f32 to vector<8x128xf32>
    %79 = arith.select %75, %77, %78 : vector<8x128xi1>, vector<8x128xf32>
    %80 = arith.subf %70, %79 : vector<8x128xf32>
    %c3_i32 = arith.constant 3 : i32
    %81 = vector.broadcast %c3_i32 : i32 to vector<1x128xi32>
    %82 = arith.cmpi eq, %17, %81 : vector<1x128xi32>
    %83 = vector.extract_strided_slice %16 {offsets = [0, 3], sizes = [8, 1], strides = [1, 1]} : vector<8x4xf32> to vector<8x1xf32>
    %cst_15 = arith.constant 0.000000e+00 : f32
    %84 = vector.shape_cast %82 : vector<1x128xi1> to vector<1x128xi1>
    %85 = vector.broadcast %84 : vector<1x128xi1> to vector<8x128xi1>
    %86 = vector.shape_cast %83 : vector<8x1xf32> to vector<8x1xf32>
    %87 = vector.broadcast %86 : vector<8x1xf32> to vector<8x128xf32>
    %88 = vector.broadcast %cst_15 : f32 to vector<8x128xf32>
    %89 = arith.select %85, %87, %88 : vector<8x128xi1>, vector<8x128xf32>
    %90 = arith.subf %80, %89 : vector<8x128xf32>
    %c0_16 = arith.constant 0 : index
    %c0_17 = arith.constant 0 : index
    %91 = vector.load %arg5[%c0_16, %c0_17] : memref<8x128xf32, #tpu.memory_space<vmem>>, vector<8x128xf32>
    tpu.vector_store %arg5[%c0_16, %c0_17], %90 {strides = array<i32>} : memref<8x128xf32, #tpu.memory_space<vmem>>, vector<8x128xf32>,
    return
  }
  func.func @transform_0(%arg0: i32) -> (i32, i32) {
    %c0_i32 = arith.constant 0 : i32
    %c0_i32_0 = arith.constant 0 : i32
    %c0_i32_1 = arith.constant 0 : i32
    return %c0_i32, %c0_i32_0 : i32, i32
  }
  func.func @transform_1(%arg0: i32) -> (i32, i32) {
    %c0_i32 = arith.constant 0 : i32
    %c0_i32_0 = arith.constant 0 : i32
    return %arg0, %c0_i32 : i32, i32
  }
  func.func @transform_2(%arg0: i32) -> (i32, i32) {
    %c0_i32 = arith.constant 0 : i32
    %c0_i32_0 = arith.constant 0 : i32
    return %arg0, %c0_i32 : i32, i32
  }
  func.func @transform_3(%arg0: i32) -> (i32, i32) {
    %c0_i32 = arith.constant 0 : i32
    %c0_i32_0 = arith.constant 0 : i32
    %c0_i32_1 = arith.constant 0 : i32
    return %c0_i32, %c0_i32_0 : i32, i32
  }
  func.func @transform_4(%arg0: i32) -> (i32, i32) {
    %c0_i32 = arith.constant 0 : i32
    %c0_i32_0 = arith.constant 0 : i32
    return %arg0, %c0_i32 : i32, i32
  }
}

</mosaic_0001>

<bundles_post_ra>
// kernel: tpu_custom_call.1
= control target key start
LH: loop header
LB: loop body
LE: loop exit
PB: predicated region body
PF: predicated region fallthrough
CT: control target
= control target key end

     0   :  { %9 = vsyncpa [#allocation3], 0  ;;  %s651_s0 = inlined_call_operand.vmem [shape: s32[1,128], index: 0, kind: input, shape index: {}]   ;;  %s652_s1 = inlined_call_operand.vmem [shape: f32[16,4], index: 1, kind: input, shape index: {}]   ;;  %s653_s2 = inlined_call_operand.vmem [shape: f32[16,4], index: 2, kind: input, shape index: {}]   ;;  %s654_s3 = inlined_call_operand.vmem [shape: f32[4,128], index: 3, kind: input, shape index: {}]   ;;  %s655_s4 = inlined_call_operand.hbm [shape: f32[16,128], index: 4, kind: output, shape index: {}]  }
   0x1   :  { %11 = vsyncpa [#allocation3 + $0x1], 0  ;;  %s549_s15 = smov 0   ;;  %s551_s16 = smov 0  }
   0x2   :  { %s553_s17 = smov 0   ;;  %s555_s18 = smov 0  }
   0x3 LB: > { %s570_s19 = sadd.s32 4294967295, %s518_s18   ;;  %s390_s20 = sadd.s32 4294967294, %s518_s18   ;;  %s518_s18 = sphi %s555_s18, %s661_s18   ;;  %s514_s17 = sphi %s553_s17, %s660_s17   ;;  %s510_s16 = sphi %s551_s16, %s659_s16   ;;  %s506_s15 = sphi %s549_s15, %s658_s15  }
   0x4   : > { %s574_s21 = sadd.s32 1, %s518_s18   ;;  %s118_s22 = sadd.s32 1, %s514_s17 }
   0x5   : > { %s115_s23 = ssub.s32 %s518_s18, %s574_s21  ;;  %p128_p0 = scmp.ne.s32.totalorder %s514_s17, %s510_s16 }
   0x6   : > { %p116_p1 = scmp.eq.s32.totalorder %s115_s23, 0  ;;  %p129_p2 = scmp.eq.s32.totalorder %s570_s19, 1 }
   0x7   : > { %p134_p3 = scmp.ne.s32.totalorder %s510_s16, %s506_s15  ;;  %p135_p4 = scmp.eq.s32.totalorder %s390_s20, 1 }
   0x8   : > { %s585_s24 = scalar_select %p116_p1, %s514_s17, %s118_s22  }
   0x9   : > { %p587_p5 = por %p129_p2, %p128_p0  ;;  %p591_p6 = por %p135_p4, %p134_p3 }
   0xa   : > { %p393_p7 = scmp.ge.s32.totalorder %s518_s18, 1  ;;  %p173_p8 = scmp.lt.s32.totalorder %s518_s18, 3 }
   0xc   : > { %p174_p9 = pnand %p393_p7, %p173_p8 }
   0xd   : > { %p202_p10 = scmp.lt.s32.totalorder (!%p174_p9), %s570_s19, 1  ;;  %s199_s13 = sand.u32 (!%p174_p9), 1, %s510_s16  }
   0xe   : > { %177 = sbr.rel (%p174_p9) target bundleno = 414 (0x19e), region = 36  ;;  %s394_s14 = sshll.u32 (!%p174_p9), %s199_s13, 3 }
   0xf   : > { %s398_s20 = sshll.u32 (!%p174_p9), %s570_s19, 3  ;;  %s476_s9 = scalar_lea.hbm (!%p174_p9), %s655_s4, 16 }
  0x13   : > { %s203_s27 = scalar_select %p202_p10, %s570_s19, 1  ;;  %vm211_vm0 = vcmask 31744   ;;  %v520_v3 = vmov 0   ;;  %v521_v4 = vmov 2   ;;  %v522_v5 = vmov 1  }
  0x14   : > { %444 = vset.pattern.permute.xlu1 %v520_v3  ;;  %446 = vset.pattern.permute.xlu2 %v521_v4  ;;  %v523_v11 = vmov 3   ;;  %v228_v19 = vld [vmem:[%s654_s3] sm:$0xf]  ;;  %s304_s19 = scalar_lea.sflag [#allocation3], %s199_s13 }
  0x15   : > { %s395_s28 = sshll.u32 %s203_s27, 3  ;;  %448 = vset.pattern.permute.xlu0 %v520_v3  ;;  %v234_v20 = vperm.slane %v228_v19, 0  ;;  %v241_v21 = vperm.slane %v228_v19, 1  ;;  %v249_v24 = vperm.slane %v228_v19, 2  ;;  %v257_v27 = vperm.slane %v228_v19, 3  ;;  %s314_s27 = scalar_lea.hbm %s655_s4, %s398_s20 }
  0x16   : > { %s205_s5 = scalar_lea.vmem %s652_s1, %s395_s28  ;;  %s209_s8 = scalar_lea.vmem %s653_s2, %s395_s28  ;;  %v226_v28 = vld [vmem:[%s651_s0] sm:$0x1] }
  0x17   : > { %v210_v0 = vld [vmem:[%s205_s5] sm:$0xff]  ;;  %vm261_vm1 = vcmp.eq.s32.totalorder %v226_v28, 0  ;;  %vm272_vm2 = vcmp.eq.s32.totalorder %v226_v28, 1  ;;  %vm282_vm3 = vcmp.eq.s32.totalorder %v226_v28, 2  ;;  %vm292_vm4 = vcmp.eq.s32.totalorder %v226_v28, 3  ;;  %s201_s28 = scalar_lea.vmem [#allocation2], %s394_s14 }
  0x18   : > { %v212_v1 = vsel %vm211_vm0, %v210_v0, -inf  ;;  %v227_v2 = vld [vmem:[%s209_s8] sm:$0xff]  ;;  %v262_v33 = vsel %vm261_vm1, 1, %v520_v3  ;;  %v273_v37 = vsel %vm272_vm2, 1, %v520_v3  ;;  %v283_v42 = vsel %vm282_vm3, 1, %v520_v3  ;;  %s316_s29 = sshll.u32 %s201_s28, 4  ;;  %s317_s29 = int_to_ptr.vmem [resolvable:$true] %s316_s29 }
  0x19   : > { %213 = vmax.xlane.f32.xlu0 %v212_v1  ;;  %231 = vperm.xlu1 %444, %v227_v2   ;;  %v263_v38 = vperm.slane %v262_v33, 0  ;;  %v274_v41 = vperm.slane %v273_v37, 0  ;;  %v293_v44 = vsel %vm292_vm4, 1, %v520_v3  ;;  %v284_v45 = vperm.slane %v283_v42, 0  ;;  %s318_s30 = sshll.u32 %s314_s27, 4  ;;  %s319_s30 = int_to_ptr.hbm [resolvable:$true] %s318_s30 }
  0x1a   : > { %246 = vperm.xlu2 %446, %v227_v2   ;;  %v294_v50 = vperm.slane %v293_v44, 0  ;;  %s470_s5 = sshra.s32 %s319_s30, 4  ;;  %s471_s5 = int_to_ptr.hbm [resolvable:$true] %s470_s5 }
  0x1b   : > { %vm264_vm5 = vcmp.eq.s32.totalorder %v263_v38, 1  ;;  %vm275_vm6 = vcmp.eq.s32.totalorder %v274_v41, 1  ;;  %vm285_vm7 = vcmp.eq.s32.totalorder %v284_v45, 1  ;;  %s472_s6 = scalar_lea.hbm %s471_s5, 8  ;;  %p477_p0 = scmp.lt.s32.totalorder %s471_s5, %s655_s4 }
  0x1c   : > { %vm295_vm8 = vcmp.eq.s32.totalorder %v294_v50, 1  ;;  %p473_p11 = scmp.ne.s32.totalorder %s471_s5, %s472_s6  ;;  %p478_p1 = scmp.lt.s32.totalorder %s476_s9, %s472_s6 }
  0x1e   : > { %p474_p12 = pnand %p473_p11, %p587_p5  ;;  %p479_p2 = por %p478_p1, %p477_p0 }
  0x20   : > { %p475_p13 = pneg %p474_p12 }
  0x21   : > { %445 = vset.pattern.permute.xlu1 %v522_v5 }
  0x22   : > { %238 = vperm.xlu1 %445, %v227_v2   ;;  %447 = vset.pattern.permute.xlu2 %v523_v11  ;;  %p480_p3 = pnand %p479_p2, %p475_p13 }
  0x23   : > { %254 = vperm.xlu2 %447, %v227_v2  }
  0x2b   : > { %449 = vset.pattern.permute.xlu2 %v521_v4 }
  0x74   : > { %v247_v22 = vpop.permute.xlu2 %246 }
  0x75   : > { %v250_v29 = vsub.f32 %v247_v22, %v249_v24 }
  0x77   : > { %v251_v34 = vand.u32 2147483647, %v250_v29 }
  0x7d   : > { %v255_v32 = vpop.permute.xlu2 %254 }
  0x7e   : > { %v258_v35 = vsub.f32 %v255_v32, %v257_v27 }
  0x80   : > { %v259_v39 = vand.u32 2147483647, %v258_v35 }
  0x8b   : > { %v232_v18 = vpop.permute.xlu1 %231 }
  0x8c   : > { %v214_v6 = vpop.xlane.xlu0 %213  ;;  %v235_v25 = vsub.f32 %v232_v18, %v234_v20 }
  0x8d   : > { %v215_v7 = vsub.f32 %v210_v0, %v214_v6 }
  0x8e   : > { %v236_v30 = vand.u32 2147483647, %v235_v25 }
  0x8f   : > { %v216_v8 = vmul.f32 1.442695, %v215_v7 }
  0x91   : > { %452 = vpow2.f32 %v216_v8 }
  0x94   : > { %v239_v23 = vpop.permute.xlu1 %238 }
  0x95   : > { %v242_v26 = vsub.f32 %v239_v23, %v241_v21 }
  0x97   : > { %v453_v9 = vpop.eup %452  ;;  %v243_v31 = vand.u32 2147483647, %v242_v26 }
  0x98   : > { %v218_v10 = vsel %vm211_vm0, %v453_v9, 0.0 }
  0x99   : > { %219 = vadd.xlane.f32.xlu0 %v218_v10  ;;  %v244_v36 = vadd.f32 %v243_v31, %v236_v30 }
  0x9b   : > { %v252_v40 = vadd.f32 %v251_v34, %v244_v36 }
  0x9d   : > { %v260_v46 = vadd.f32 %v259_v39, %v252_v40 }
 0x10c   : > { %v220_v12 = vpop.xlane.xlu0 %219 }
 0x10d   : > { %454 = vrcp.f32 %v220_v12 }
 0x113   : > { %v455_v13 = vpop.eup %454 }
 0x114   : > { %v222_v14 = vmul.f32 %v455_v13, %v220_v12 }
 0x116   : > { %v223_v15 = vsub.f32 2.0, %v222_v14 }
 0x118   : > { %v224_v16 = vmul.f32 %v455_v13, %v223_v15 }
 0x11a   : > { %v225_v17 = vmul.f32 %v453_v9, %v224_v16 }
 0x11c   : > { %287 = vperm.xlu2 %449, %v225_v17   ;;  %277 = vperm.xlu1 %445, %v225_v17  }
 0x11d   : > { %267 = vperm.xlu0 %448, %v225_v17  }
 0x124   : > { %450 = vset.pattern.permute.xlu1 %v523_v11 }
 0x125   : > { %297 = vperm.xlu1 %450, %v225_v17   ;;  %451 = vset.pattern.permute.xlu0 %v523_v11 }
 0x176   : > { %v288_v52 = vpop.permute.xlu2 %287 }
 0x177   : > { %v290_v54 = vsel %vm285_vm7, %v288_v52, 0.0 }
 0x18e   : > { %v278_v43 = vpop.permute.xlu1 %277 }
 0x18f   : > { %v268_v47 = vpop.permute.xlu0 %267  ;;  %v280_v51 = vsel %vm275_vm6, %v278_v43, 0.0 }
 0x190   : > { %v270_v48 = vsel %vm264_vm5, %v268_v47, 0.0 }
 0x191   : > { %v271_v49 = vsub.f32 %v260_v46, %v270_v48 }
 0x193   : > { %v281_v53 = vsub.f32 %v271_v49, %v280_v51 }
 0x195   : > { %v291_v56 = vsub.f32 %v281_v53, %v290_v54 }
 0x197   : > { %v298_v55 = vpop.permute.xlu1 %297 }
 0x198   : > { %v300_v57 = vsel %vm295_vm8, %v298_v55, 0.0 }
 0x199   : > { %v301_v58 = vsub.f32 %v291_v56, %v300_v57 }
 0x19b   : > { %302 = vst [vmem:[%s201_s28] sm:$0xff] %v301_v58 }
 0x19c   : > { %483 = shalt.err (!%p480_p3)
}
 0x19d   : > { %401 = dma.vmem_to_hbm [thread:$0]  (%p587_p5), %s317_s29, 128, %s319_s30, %s304_s19  }
 0x19e PF: > { %p407_p4 = scmp.ge.s32.totalorder %s518_s18, 2  ;;  %s330_s12 = sand.u32 1, %s506_s15  }
 0x19f   : > { %s331_s13 = scalar_lea.sflag [#allocation3], %s330_s12 }
 0x1a0   : > { %p404_p7 = pnand %p407_p4, %p591_p6 }
 0x1a2   : > { %p405_p8 = pneg %p404_p7 }
 0x1a4   : > { %501 = dma.done.wait (%p405_p8), %s331_s13, 128  }
 0x1a5   : > { %503 = vsyncadd (%p405_p8), %s331_s13, 4294967168  ;;  %p14_p9 = scmp.ge.s32.totalorder %s574_s21, 4   ;;  %s658_s15 = smov %s510_s16 }
 0x1a6   : > { %s659_s16 = smov %s514_s17  ;;  %s660_s17 = smov %s585_s24 }
 0x1a7   : > { %s661_s18 = smov %s574_s21  ;;  %16 = sbr.rel (!%p14_p9) target bundleno = 3 (0x3), region = 74 }
 0x1ac   :  { %337 = vsyncpa [#allocation3], 1 }
 0x1ad   :  { %339 = vsyncpa [#allocation3 + $0x1], 1 }

</bundles_post_ra>
